<compile_context>
chip_gen: v7x
topology: tpu7x:2x2x1
jax: 0.10.0
libtpu: 0.0.40
codegen_flags: <defaults>
</compile_context>

<pallas_src>
import functools

import jax
import jax.numpy as jnp
import numpy as np
from jax.experimental import pallas as pl
from jax.experimental.pallas import tpu as pltpu


def conv_relu_kernel(x_ref, w_ref, b_ref, o_ref, *, kh, kw, w_padded, out_len):
    """Fused conv (one K=KH*KW*Cin matmul) + bias + ReLU for one sample.

    x_ref: (Cin, H_pad*W_pad)   flattened zero-padded input (spatial minor / lane axis)
    w_ref: (Cout, KH*KW*Cin)    tap-major, channel-minor flattened weights
    b_ref: (Cout, 1)
    o_ref: (Cout, out_len)      out_len = H_out * W_pad  (rows keep padded width)
    """
    # Build the (KH*KW*Cin, out_len) patch matrix from contiguous lane slices of
    # the flattened padded input (no HBM duplication, no strided reshape).
    taps = []
    for i in range(kh):
        for j in range(kw):
            off = i * w_padded + j
            taps.append(x_ref[:, off:off + out_len])
    patches = jnp.concatenate(taps, axis=0)                       # (KH*KW*Cin, L)

    # Single MXU matmul, f32 accumulation, fused bias + ReLU epilogue.
    acc = jnp.dot(w_ref[...], patches, preferred_element_type=jnp.float32)
    acc = acc + b_ref[...].astype(jnp.float32)
    o_ref[...] = jnp.maximum(acc, 0.0).astype(o_ref.dtype)


@functools.partial(jax.jit, static_argnames=("padding",))
def basic_conv2d(x_nchw, w_oihw, bias, *, padding=1):
    """Forward pass of BasicConv2d: ReLU(Conv2d(x)), stride=1.

    x_nchw : (N, Cin, H, W) float32
    w_oihw : (Cout, Cin, KH, KW)
    bias   : (Cout,)
    returns (N, Cout, H_out, W_out) in NCHW (PyTorch semantics).
    """
    n, cin, h, w = x_nchw.shape
    cout, _, kh, kw = w_oihw.shape

    # stride=1 only (what this module instance uses).
    h_out = h + 2 * padding - kh + 1
    w_out = w + 2 * padding - kw + 1
    w_padded = w + 2 * padding
    # One extra zero row at the bottom so every flattened tap window
    # q + i*W_pad + j stays in bounds for all q in [0, H_out*W_pad).
    h_padded = h_out + kh                      # = h + 2*padding + 1 for stride 1
    out_len = h_out * w_padded                 # lane-dense output width per sample

    # --- glue (cheap, no 9x duplication): pad once, flatten spatial, reorder W ---
    x_p = jnp.pad(
        x_nchw,
        ((0, 0), (0, 0), (padding, padding + (h_padded - h - 2 * padding)),
         (padding, padding)),
    )                                          # (N, Cin, H_pad, W_pad)
    x_flat = x_p.reshape(n, cin, h_padded * w_padded)

    # Weight flattened tap-major / channel-minor to match the in-kernel concat order.
    w_flat = jnp.transpose(w_oihw, (0, 2, 3, 1)).reshape(cout, kh * kw * cin)
    b2 = bias.reshape(cout, 1)

    kernel = functools.partial(
        conv_relu_kernel, kh=kh, kw=kw, w_padded=w_padded, out_len=out_len
    )

    out = pl.pallas_call(
        kernel,
        out_shape=jax.ShapeDtypeStruct((n, cout, out_len), x_nchw.dtype),
        grid=(n,),
        in_specs=[
            pl.BlockSpec((None, cin, h_padded * w_padded), lambda b: (b, 0, 0)),
            pl.BlockSpec((cout, kh * kw * cin), lambda b: (0, 0)),
            pl.BlockSpec((cout, 1), lambda b: (0, 0)),
        ],
        out_specs=pl.BlockSpec((None, cout, out_len), lambda b: (b, 0, 0)),
        compiler_params=pltpu.CompilerParams(
            dimension_semantics=("parallel",),
            vmem_limit_bytes=32 * 1024 * 1024,
        ),
    )(x_flat, w_flat, b2)

    # Rows were computed at padded width: reshape (pure, channel-major already)
    # and crop the W_pad - W_out garbage columns.
    out = out.reshape(n, cout, h_out, w_padded)[:, :, :, :w_out]
    return out


def _reference(x_nchw, w_oihw, bias, padding=1):
    """Pure-JAX reference (lax conv) for correctness check."""
    out = jax.lax.conv_general_dilated(
        x_nchw,
        w_oihw,
        window_strides=(1, 1),
        padding=[(padding, padding), (padding, padding)],
        dimension_numbers=("NCHW", "OIHW", "NCHW"),
    )
    out = out + bias.reshape(1, -1, 1, 1)
    return jnp.maximum(out, 0.0)


if __name__ == "__main__":
    # Module config: BasicConv2d(in_channels=4, out_channels=8,
    #                            kernel_size=3, stride=1, padding=1)
    N, CIN, H, W = 2, 4, 16, 16
    COUT, KH, KW = 8, 3, 3
    PAD = 1

    key = jax.random.PRNGKey(0)
    kx, kw_, kb = jax.random.split(key, 3)

    x = jax.random.normal(kx, (N, CIN, H, W), dtype=jnp.float32)

    # Deterministic PyTorch-style uniform init (fan_in based bounds).
    fan_in = CIN * KH * KW
    bound = 1.0 / np.sqrt(fan_in)
    weight = jax.random.uniform(
        kw_, (COUT, CIN, KH, KW), dtype=jnp.float32, minval=-bound, maxval=bound
    )
    bias = jax.random.uniform(
        kb, (COUT,), dtype=jnp.float32, minval=-bound, maxval=bound
    )

    out = basic_conv2d(x, weight, bias, padding=PAD)
    out = jax.block_until_ready(out)

    ref = _reference(x, weight, bias, padding=PAD)
    assert out.shape == (N, COUT, H, W), out.shape
    np.testing.assert_allclose(np.asarray(out), np.asarray(ref), rtol=1e-4, atol=1e-4)

    print("KERNEL_OK")
</pallas_src>

<mosaic_0001>
module attributes {stable_mosaic.version = 11 : i64} {
  func.func @conv_relu_kernel(%arg0: i32, %arg1: memref<1x4x342xf32, #tpu.memory_space<vmem>>, %arg2: memref<8x36xf32, #tpu.memory_space<vmem>>, %arg3: memref<8x1xf32, #tpu.memory_space<vmem>>, %arg4: memref<1x8x288xf32, #tpu.memory_space<vmem>>) attributes {dimension_semantics = [#tpu.dimension_semantics<parallel>], iteration_bounds = array<i64: 2>, scalar_prefetch = 0 : i64, scratch_operands = 0 : i64, tpu.core_type = #tpu.core_type<tc>, window_params = [{transform_indices = @transform_0, window_bounds = array<i64: 1, 4, 342>}, {pipeline_mode = #tpu.pipeline_mode<synchronous>, transform_indices = @transform_1, window_bounds = array<i64: 8, 36>}, {pipeline_mode = #tpu.pipeline_mode<synchronous>, transform_indices = @transform_2, window_bounds = array<i64: 8, 1>}, {transform_indices = @transform_3, window_bounds = array<i64: 1, 8, 288>}]} {
    %c0 = arith.constant 0 : index
    %c0_0 = arith.constant 0 : index
    %c0_1 = arith.constant 0 : index
    %0 = vector.load %arg1[%c0, %c0_0, %c0_1] : memref<1x4x342xf32, #tpu.memory_space<vmem>>, vector<1x4x288xf32>
    %1 = vector.shape_cast %0 : vector<1x4x288xf32> to vector<4x288xf32>
    %c0_2 = arith.constant 0 : index
    %c0_3 = arith.constant 0 : index
    %c1 = arith.constant 1 : index
    %2 = vector.load %arg1[%c0_2, %c0_3, %c1] : memref<1x4x342xf32, #tpu.memory_space<vmem>>, vector<1x4x288xf32>
    %3 = vector.shape_cast %2 : vector<1x4x288xf32> to vector<4x288xf32>
    %c0_4 = arith.constant 0 : index
    %c0_5 = arith.constant 0 : index
    %c2 = arith.constant 2 : index
    %4 = vector.load %arg1[%c0_4, %c0_5, %c2] : memref<1x4x342xf32, #tpu.memory_space<vmem>>, vector<1x4x288xf32>
    %5 = vector.shape_cast %4 : vector<1x4x288xf32> to vector<4x288xf32>
    %c0_6 = arith.constant 0 : index
    %c0_7 = arith.constant 0 : index
    %c18 = arith.constant 18 : index
    %6 = vector.load %arg1[%c0_6, %c0_7, %c18] : memref<1x4x342xf32, #tpu.memory_space<vmem>>, vector<1x4x288xf32>
    %7 = vector.shape_cast %6 : vector<1x4x288xf32> to vector<4x288xf32>
    %c0_8 = arith.constant 0 : index
    %c0_9 = arith.constant 0 : index
    %c19 = arith.constant 19 : index
    %8 = vector.load %arg1[%c0_8, %c0_9, %c19] : memref<1x4x342xf32, #tpu.memory_space<vmem>>, vector<1x4x288xf32>
    %9 = vector.shape_cast %8 : vector<1x4x288xf32> to vector<4x288xf32>
    %c0_10 = arith.constant 0 : index
    %c0_11 = arith.constant 0 : index
    %c20 = arith.constant 20 : index
    %10 = vector.load %arg1[%c0_10, %c0_11, %c20] : memref<1x4x342xf32, #tpu.memory_space<vmem>>, vector<1x4x288xf32>
    %11 = vector.shape_cast %10 : vector<1x4x288xf32> to vector<4x288xf32>
    %c0_12 = arith.constant 0 : index
    %c0_13 = arith.constant 0 : index
    %c36 = arith.constant 36 : index
    %12 = vector.load %arg1[%c0_12, %c0_13, %c36] : memref<1x4x342xf32, #tpu.memory_space<vmem>>, vector<1x4x288xf32>
    %13 = vector.shape_cast %12 : vector<1x4x288xf32> to vector<4x288xf32>
    %c0_14 = arith.constant 0 : index
    %c0_15 = arith.constant 0 : index
    %c37 = arith.constant 37 : index
    %14 = vector.load %arg1[%c0_14, %c0_15, %c37] : memref<1x4x342xf32, #tpu.memory_space<vmem>>, vector<1x4x288xf32>
    %15 = vector.shape_cast %14 : vector<1x4x288xf32> to vector<4x288xf32>
    %c0_16 = arith.constant 0 : index
    %c0_17 = arith.constant 0 : index
    %c38 = arith.constant 38 : index
    %16 = vector.load %arg1[%c0_16, %c0_17, %c38] : memref<1x4x342xf32, #tpu.memory_space<vmem>>, vector<1x4x288xf32>
    %17 = vector.shape_cast %16 : vector<1x4x288xf32> to vector<4x288xf32>
    %18 = tpu.concatenate %1, %3, %5, %7, %9, %11, %13, %15, %17 in 0 : vector<4x288xf32>, vector<4x288xf32>, vector<4x288xf32>, vector<4x288xf32>, vector<4x288xf32>, vector<4x288xf32>, vector<4x288xf32>, vector<4x288xf32>, vector<4x288xf32> -> vector<36x288xf32>
    %c0_18 = arith.constant 0 : index
    %c0_19 = arith.constant 0 : index
    %19 = vector.load %arg2[%c0_18, %c0_19] : memref<8x36xf32, #tpu.memory_space<vmem>>, vector<8x36xf32>
    %cst = arith.constant dense<0.000000e+00> : vector<8x288xf32>
    %20 = tpu.matmul %19, %18, %cst {dimension_numbers = #tpu.dot_dimension_numbers<[1], [0], [0], [1], [0, 0, 1, 1], [], []>} : vector<8x36xf32>, vector<36x288xf32>, vector<8x288xf32> -> vector<8x288xf32>
    %c0_20 = arith.constant 0 : index
    %c0_21 = arith.constant 0 : index
    %21 = vector.load %arg3[%c0_20, %c0_21] : memref<8x1xf32, #tpu.memory_space<vmem>>, vector<8x1xf32>
    %22 = vector.broadcast %21 : vector<8x1xf32> to vector<8x288xf32>
    %23 = arith.addf %20, %22 : vector<8x288xf32>
    %cst_22 = arith.constant 0.000000e+00 : f32
    %24 = vector.broadcast %cst_22 : f32 to vector<8x288xf32>
    %25 = arith.maximumf %23, %24 : vector<8x288xf32>
    %c0_23 = arith.constant 0 : index
    %c0_24 = arith.constant 0 : index
    %c0_25 = arith.constant 0 : index
    %26 = vector.load %arg4[%c0_23, %c0_24, %c0_25] : memref<1x8x288xf32, #tpu.memory_space<vmem>>, vector<1x8x288xf32>
    %27 = vector.shape_cast %26 : vector<1x8x288xf32> to vector<8x288xf32>
    %28 = vector.shape_cast %25 : vector<8x288xf32> to vector<1x8x288xf32>
    tpu.vector_store %arg4[%c0_23, %c0_24, %c0_25], %28 {strides = array<i32>} : memref<1x8x288xf32, #tpu.memory_space<vmem>>, vector<1x8x288xf32>,
    return
  }
  func.func @transform_0(%arg0: i32) -> (i32, i32, i32) {
    %c0_i32 = arith.constant 0 : i32
    %c0_i32_0 = arith.constant 0 : i32
    %c0_i32_1 = arith.constant 0 : i32
    return %arg0, %c0_i32, %c0_i32_0 : i32, i32, i32
  }
  func.func @transform_1(%arg0: i32) -> (i32, i32) {
    %c0_i32 = arith.constant 0 : i32
    %c0_i32_0 = arith.constant 0 : i32
    %c0_i32_1 = arith.constant 0 : i32
    return %c0_i32, %c0_i32_0 : i32, i32
  }
  func.func @transform_2(%arg0: i32) -> (i32, i32) {
    %c0_i32 = arith.constant 0 : i32
    %c0_i32_0 = arith.constant 0 : i32
    %c0_i32_1 = arith.constant 0 : i32
    return %c0_i32, %c0_i32_0 : i32, i32
  }
  func.func @transform_3(%arg0: i32) -> (i32, i32, i32) {
    %c0_i32 = arith.constant 0 : i32
    %c0_i32_0 = arith.constant 0 : i32
    %c0_i32_1 = arith.constant 0 : i32
    return %arg0, %c0_i32, %c0_i32_0 : i32, i32, i32
  }
}

</mosaic_0001>

<bundles_post_ra>
// kernel: basic_conv2d.1
= control target key start
LH: loop header
LB: loop body
LE: loop exit
PB: predicated region body
PF: predicated region fallthrough
CT: control target
= control target key end

     0   :  { %s654_s12 = smov 0   ;;  %s721_s0 = inlined_call_operand.vmem [shape: f32[2,4,342], index: 0, kind: input, shape index: {}]   ;;  %s722_s1 = inlined_call_operand.vmem [shape: f32[8,36], index: 1, kind: input, shape index: {}]   ;;  %s723_s2 = inlined_call_operand.vmem [shape: f32[8,1], index: 2, kind: input, shape index: {}]   ;;  %s724_s3 = inlined_call_operand.vmem [shape: f32[2,8,288], index: 3, kind: output, shape index: {}]  }
   0x1 LB: > { %s505_s13 = sadd.s32 4294967295, %s620_s12   ;;  %p509_p0 = scmp.ge.s32.totalorder %s620_s12, 1  ;;  %s620_s12 = sphi %s654_s12, %s13_s12  }
   0x2   : > { %p137_p1 = scmp.lt.s32.totalorder %s620_s12, 3 }
   0x4   : > { %p138_p2 = pnand %p509_p0, %p137_p1 }
   0x5   : > { %p161_p3 = scmp.lt.s32.totalorder (!%p138_p2), %s505_s13, 1  ;;  %v622_v2 = vmov (!%p138_p2), 0.0|0.0   ;;  %s623_s18 = smov (!%p138_p2), 126   ;;  %v630_v8 = vmov (!%p138_p2), 0.0   ;;  %vm631_vm0 = vmmov (!%p138_p2), 0   ;;  %v632_v9 = vmov (!%p138_p2), 0  }
   0x6   : > { %141 = sbr.rel (%p138_p2) target bundleno = 388 (0x184), region = 32  ;;  %546 = vmatprep.subr.bf16.mxu1 (!%p138_p2), %v622_v2  ;;  %s624_s19 = smov (!%p138_p2), 110   ;;  %366 = vmatprep.mubr.f32.mxu0 (!%p138_p2), %v630_v8  ;;  %v286_v10 = vld [vmem:[%s723_s2] sm:$0xff] (!%p138_p2)  ;;  %vm185_vm1 = vcmask (!%p138_p2), 1039360   ;;  %vm272_vm2 = vcmask (!%p138_p2), 1043456   ;;  %vm209_vm3 = vcmask (!%p138_p2), 900096  }
   0x7   : > { %s625_s20 = smov (!%p138_p2), 127   ;;  %s626_s21 = smov (!%p138_p2), 109   ;;  %535 = vmatprep.mubr.msk.f32.mxu1 (!%p138_p2), %vm631_vm0, %v630_v8  ;;  %609 = vset.pattern.permute.xlu1 (!%p138_p2), %v632_v9  ;;  %vm197_vm4 = vcmask (!%p138_p2), 1031168   ;;  %vm221_vm5 = vcmask (!%p138_p2), 891904   ;;  %vm233_vm6 = vcmask (!%p138_p2), 883712   ;;  %vm245_vm7 = vcmask (!%p138_p2), 752640  }
   0x8   : > { %s627_s22 = smov (!%p138_p2), 108   ;;  %s628_s23 = smov (!%p138_p2), 92   ;;  %610 = vset.pattern.permute.xlu0 (!%p138_p2), %v632_v9  ;;  %vm257_vm8 = vcmask (!%p138_p2), 744448   ;;  %vm269_vm9 = vcmask (!%p138_p2), 736256   ;;  %v285_v9 = vld [vmem:[%s722_s1] sm:$0xff] (!%p138_p2)  ;;  %vm292_vm10 = vcmask (!%p138_p2), 293888  }
   0x9   : > { %s629_s24 = smov (!%p138_p2), 91   ;;  %s633_s25 = smov (!%p138_p2), 90   ;;  %vm448_vm11 = vcmask (!%p138_p2), 261120  }
   0xd   : > { %s726_s13 = smov (!%p161_p3, %s505_s13), 1 }
   0xe   : > { %s552_s14 = smul.u32 12, %s726_s13 }
   0xf   : > { %s553_s30 = smul.u32 24, %s726_s13 }
  0x10   : > { %s165_s17 = scalar_lea.vmem %s721_s0, %s552_s14 }
  0x11   : > { %v668_v0 = vld [vmem:[%s165_s17] sm:$0xff]  ;;  %v172_v1 = vld [vmem:[%s165_s17 + $0x8] sm:$0xf]  ;;  %s170_s6 = scalar_lea.vmem %s724_s3, %s553_s30 }
  0x12   : > { %191 = vrot.lane.b32.xlu0 %v668_v0, %s623_s18  ;;  %v178_v3 = vcombine.low %v172_v1, %v172_v1  ;;  %v175_v4 = vcombine.high %v668_v0, %v668_v0  ;;  %v177_v6 = vcombine.low %v668_v0, %v668_v0 }
  0x14   : > { %v584_v5 = vpack.i.bf16 %v178_v3, %v668_v0  ;;  %v579_v7 = vpack.i.bf16 %v172_v1, %v175_v4 }
  0x16   : > { %585 = vrot.lane.b32.xlu1 %v584_v5, %s624_s19  ;;  %575 = vrot.lane.b32.xlu0 %v584_v5, %s625_s20 }
  0x1a   : > { %179 = vrot.lane.b32.xlu1 %v177_v6, %s625_s20  ;;  %580 = vrot.lane.b32.xlu0 %v579_v7, %s623_s18 }
  0x1e   : > { %203 = vrot.lane.b32.xlu1 %v177_v6, %s624_s19  ;;  %590 = vrot.lane.b32.xlu0 %v579_v7, %s626_s21 }
  0x22   : > { %595 = vrot.lane.b32.xlu1 %v584_v5, %s627_s22  ;;  %600 = vrot.lane.b32.xlu0 %v579_v7, %s628_s23 }
  0x26   : > { %605 = vrot.lane.b32.xlu1 %v584_v5, %s629_s24  ;;  %215 = vrot.lane.b32.xlu0 %v668_v0, %s626_s21 }
  0x2a   : > { %227 = vrot.lane.b32.xlu1 %v177_v6, %s627_s22  ;;  %239 = vrot.lane.b32.xlu0 %v668_v0, %s628_s23 }
  0x2e   : > { %251 = vrot.lane.b32.xlu1 %v177_v6, %s629_s24  ;;  %265 = vrot.lane.b32.xlu0 %v175_v4, %s633_s25 }
  0x32   : > { %267 = vrot.lane.b32.xlu1 %v172_v1, %s633_s25  ;;  %263 = vrot.lane.b32.xlu0 %v668_v0, %s633_s25 }
  0x36   : > { %289 = vperm.xlu1 %609, %v286_v10  }
  0x84   : > { %v192_v11 = vpop.permute.xlu0 %191 }
  0x88   : > { %v586_v12 = vpop.permute.xlu1 %585  ;;  %v576_v13 = vpop.permute.xlu0 %575 }
  0x89   : > { %v578_v14 = vunpack.i.h.bf16 %v576_v13  ;;  %v577_v15 = vunpack.i.l.bf16 %v576_v13  ;;  %v588_v16 = vunpack.i.h.bf16 %v586_v12  ;;  %v587_v17 = vunpack.i.l.bf16 %v586_v12 }
  0x8b   : > { %v187_v18 = vsel %vm185_vm1, %v577_v15, %v578_v14  ;;  %v275_v23 = vsel %vm272_vm2, %v172_v1, %v578_v14  ;;  %v211_v28 = vsel %vm209_vm3, %v587_v17, %v588_v16 }
  0x8c   : > { %v180_v19 = vpop.permute.xlu1 %179  ;;  %v581_v20 = vpop.permute.xlu0 %580  ;;  %v274_v24 = vsel %vm272_vm2, %v175_v4, %v187_v18 }
  0x8d   : > { %v583_v21 = vunpack.i.h.bf16 %v581_v20  ;;  %v582_v22 = vunpack.i.l.bf16 %v581_v20  ;;  %v186_v25 = vsel %vm185_vm1, %v180_v19, %v577_v15 }
  0x8e   : > { %v273_v36 = vsel %vm272_vm2, %v668_v0, %v186_v25 }
  0x8f   : > { %v278_v26 = vsel %vm272_vm2, %v583_v21, %v588_v16  ;;  %v199_v27 = vsel %vm197_vm4, %v582_v22, %v583_v21  ;;  %v198_v35 = vsel %vm197_vm4, %v192_v11, %v582_v22 }
  0x90   : > { %v204_v29 = vpop.permute.xlu1 %203  ;;  %v591_v30 = vpop.permute.xlu0 %590  ;;  %v547_v31 = vpack.c.bf16 %v278_v26, %v275_v23  ;;  %v277_v32 = vsel %vm272_vm2, %v199_v27, %v211_v28 }
  0x91   : > { %v210_v33 = vsel %vm209_vm3, %v204_v29, %v587_v17  ;;  %v538_v34 = vpack.c.bf16 %v277_v32, %v274_v24  ;;  %v593_v39 = vunpack.i.h.bf16 %v591_v30  ;;  %v592_v40 = vunpack.i.l.bf16 %v591_v30 }
  0x92   : > { %548 = vmatpush3.bf16.msra.mxu1 %v547_v31  ;;  %v276_v37 = vsel %vm272_vm2, %v198_v35, %v210_v33 }
  0x93   : > { %539 = vmatprep.subr.bf16.mxu0 %v538_v34  ;;  %v540_v38 = vpack.c.bf16 %v276_v37, %v273_v36  ;;  %549 = vmatprep.subr.bf16.mxu1 %v622_v2  ;;  %v223_v49 = vsel %vm221_vm5, %v592_v40, %v593_v39 }
  0x94   : > { %v596_v41 = vpop.permute.xlu1 %595  ;;  %v601_v42 = vpop.permute.xlu0 %600 }
  0x95   : > { %v598_v43 = vunpack.i.h.bf16 %v596_v41  ;;  %v597_v44 = vunpack.i.l.bf16 %v596_v41  ;;  %v603_v45 = vunpack.i.h.bf16 %v601_v42  ;;  %v602_v46 = vunpack.i.l.bf16 %v601_v42  ;;  %541 = vmatpush1.bf16.msra.mxu0 %v540_v38 }
  0x97   : > { %v235_v52 = vsel %vm233_vm6, %v597_v44, %v598_v43  ;;  %v247_v53 = vsel %vm245_vm7, %v602_v46, %v603_v45  ;;  %v281_v55 = vsel %vm272_vm2, %v593_v39, %v598_v43 }
  0x98   : > { %v606_v47 = vpop.permute.xlu1 %605  ;;  %v216_v48 = vpop.permute.xlu0 %215  ;;  %v280_v60 = vsel %vm272_vm2, %v223_v49, %v235_v52 }
  0x99   : > { %v608_v50 = vunpack.i.h.bf16 %v606_v47  ;;  %v607_v51 = vunpack.i.l.bf16 %v606_v47  ;;  %v222_v2 = vsel %vm221_vm5, %v216_v48, %v592_v40 }
  0x9b   : > { %v259_v54 = vsel %vm257_vm8, %v607_v51, %v608_v50  ;;  %v284_v56 = vsel %vm272_vm2, %v603_v45, %v608_v50 }
  0x9c   : > { %v228_v57 = vpop.permute.xlu1 %227  ;;  %v240_v58 = vpop.permute.xlu0 %239  ;;  %v550_v59 = vpack.c.bf16 %v284_v56, %v281_v55  ;;  %v283_v61 = vsel %vm272_vm2, %v247_v53, %v259_v54 }
  0x9d   : > { %v542_v62 = vpack.c.bf16 %v283_v61, %v280_v60  ;;  %v234_v63 = vsel %vm233_vm6, %v228_v57, %v597_v44  ;;  %v246_v3 = vsel %vm245_vm7, %v240_v58, %v602_v46 }
  0x9e   : > { %551 = vmatpush3.bf16.msra.mxu1 %v550_v59  ;;  %v279_v5 = vsel %vm272_vm2, %v222_v2, %v234_v63 }
  0x9f   : > { %543 = vmatprep.subr.bf16.mxu0 %v542_v62  ;;  %533 = vmatprep.subr.mxu1 %v630_v8 }
  0xa0   : > { %v252_v0 = vpop.permute.xlu1 %251  ;;  %v266_v1 = vpop.permute.xlu0 %265 }
  0xa1   : > { %v258_v4 = vsel %vm257_vm8, %v252_v0, %v607_v51 }
  0xa2   : > { %v282_v6 = vsel %vm272_vm2, %v246_v3, %v258_v4 }
  0xa3   : > { %v544_v7 = vpack.c.bf16 %v282_v6, %v279_v5 }
  0xa4   : > { %v268_v8 = vpop.permute.xlu1 %267  ;;  %v264_v11 = vpop.permute.xlu0 %263 }
  0xa5   : > { %v271_v10 = vsel %vm269_vm9, %v266_v1, %v268_v8  ;;  %545 = vmatpush1.bf16.msra.mxu0 %v544_v7  ;;  %534 = vmatpush3.msk.msra.mxu1 %vm272_vm2, %v268_v8  ;;  %v270_v12 = vsel %vm269_vm9, %v264_v11, %v266_v1 }
  0xa6   : > { %512 = vmatprep.subr.msk.mxu0 %vm272_vm2, %v271_v10  ;;  %536 = vmatmul.mubr.msk.f32.vlgmr.msra.gmra.mrb[0].mxu1 %vm292_vm10, %v285_v9 }
  0xa9   : > { %513 = vmatpush1.msk.msra.mxu0 %vm272_vm2, %v270_v12 }
  0xaa   : > { %514 = vmatmul.mubr.msk.f32.vlgmr.msra.gmra.mrb[0].mxu0 %vm292_vm10, %v285_v9 }
  0xb5   : > { %v290_v13 = vpop.permute.xlu1 %289 }
 0x179   : > { %v439_v14 = vpop.f32.mrb[0].mxu1 }
 0x17a   : > { %v440_v15 = vadd.f32 %v439_v14, %v290_v13  ;;  %v537_v16 = vpop.f32.mrb[1].mxu1 }
 0x17c   : > { %v445_v17 = vmax.f32 %v440_v15, 0.0 }
 0x17d   : > { %v368_v18 = vpop.f32.mrb[0].mxu0 }
 0x17e   : > { %v369_v19 = vadd.f32 %v368_v18, %v290_v13  ;;  %449 = vst.msk [vmem:[%s170_s6 + $0x10] sm:$0xff] %vm448_vm11, %v445_v17  ;;  %v370_v20 = vpop.f32.mrb[1].mxu0 }
 0x17f   : > { %v371_v21 = vadd.f32 %v370_v20, %v290_v13 }
 0x180   : > { %v443_v22 = vmax.f32 %v369_v19, 0.0 }
 0x181   : > { %v444_v23 = vmax.f32 %v371_v21, 0.0 }
 0x182   : > { %446 = vst [vmem:[%s170_s6] sm:$0xff] %v443_v22 }
 0x183   : > { %447 = vst [vmem:[%s170_s6 + $0x8] sm:$0xff] %v444_v23 }
 0x184 PF: > { %s13_s12 = sadd.s32 1, %s620_s12  }
 0x185   : > { %p10_p4 = scmp.ge.s32.totalorder %s13_s12, 4  }
 0x187   :  { %12 = sbr.rel (!%p10_p4) target bundleno = 1 (0x1), region = 62 }

</bundles_post_ra>
